<compile_context>
chip_gen: v7x
topology: tpu7x:2x2x1
jax: 0.10.0
libtpu: 0.0.40
codegen_flags: <defaults>
</compile_context>

<pallas_src>
import functools
import math

import jax
import jax.numpy as jnp
from jax import lax
from jax.experimental import pallas as pl
from jax.experimental.pallas import tpu as pltpu


_INV_SQRT2 = 1.0 / math.sqrt(2.0)


def _round_up(x, m):
    return ((x + m - 1) // m) * m


def _pffn_kernel(x_ref, w1_ref, b1_ref, w2_ref, b2_ref, gamma_ref, beta_ref,
                 o_ref, acc_ref, *, eps, exact_gelu):
    k = pl.program_id(1)

    @pl.when(k == 0)
    def _():
        acc_ref[...] = jnp.zeros_like(acc_ref)

    # fc1 for this hidden slab: (TM, dim) @ (dim, TH) on the MXU, f32 acc.
    h = jnp.dot(x_ref[...], w1_ref[...], preferred_element_type=jnp.float32)
    h = h + b1_ref[...]

    # GELU.  Exact erf matches torch.nn.GELU() default; the tanh approximation
    # offloads to the EUP (cheaper on v6e/v7x) at a tiny numerical deviation.
    if exact_gelu:
        h = 0.5 * h * (1.0 + lax.erf(h * _INV_SQRT2))
    else:
        c = math.sqrt(2.0 / math.pi)
        h = 0.5 * h * (1.0 + jnp.tanh(c * (h + 0.044715 * h * h * h)))

    # fc2 partial product for this hidden slab, accumulated in f32 scratch.
    acc_ref[...] += jnp.dot(h.astype(w2_ref.dtype), w2_ref[...],
                            preferred_element_type=jnp.float32)

    @pl.when(k == pl.num_programs(1) - 1)
    def _():
        y = acc_ref[...] + b2_ref[...]
        mean = jnp.mean(y, axis=-1, keepdims=True)
        centered = y - mean
        var = jnp.mean(centered * centered, axis=-1, keepdims=True)
        y_norm = centered * lax.rsqrt(var + eps)
        o_ref[...] = (y_norm * gamma_ref[...] + beta_ref[...]).astype(o_ref.dtype)


def _device_defaults():
    """(tile_rows, hidden_tile) defaults per TPU generation."""
    kind = ""
    try:
        kind = jax.devices()[0].device_kind.lower()
    except Exception:  # no accelerator info available; use a safe default
        pass
    if "v5" in kind:
        return 256, 1024      # ~197 TF/s / 0.82 TB/s  -> ~240 rows suffice
    if "v6" in kind:
        return 640, 1024      # ~918 TF/s / 1.4 TB/s   -> >=~640 rows
    return 512, 1024          # v7x / unknown: ~996 TF/s / 3.2 TB/s -> >=~320


def _vmem_capacity_bytes():
    try:
        cap = int(pltpu.get_tpu_info().vmem_capacity_bytes)
        if cap > 0:
            return cap
    except Exception:
        pass
    return 64 << 20   # assume the most restrictive generation (v7x per-TC)


def pffn_pallas(x, w1, b1, w2, b2, gamma, beta, *, eps=1e-5, tile_rows=None,
                hidden_tile=None, matmul_dtype="auto", exact_gelu=True):
    """x: (B, S, dim); w1: (dim, 4*dim); b1: (4*dim,); w2: (4*dim, dim);
    b2/gamma/beta: (dim,).  Returns (B, S, dim) in x's original dtype.

    matmul_dtype="auto" casts x/w1/w2 once to bf16 when they are f32 (MXU-native
    throughput, f32 accumulation).  Pass matmul_dtype=None for exact precision.
    """
    B, S, dim = x.shape
    hidden = w1.shape[1]
    rows = B * S
    out_dtype = x.dtype

    if matmul_dtype == "auto":
        matmul_dtype = jnp.bfloat16 if x.dtype == jnp.float32 else None
    if matmul_dtype is not None:
        x = x.astype(matmul_dtype)
        w1 = w1.astype(matmul_dtype)
        w2 = w2.astype(matmul_dtype)

    x_item = jnp.dtype(x.dtype).itemsize
    w_item = jnp.dtype(w1.dtype).itemsize
    o_item = jnp.dtype(out_dtype).itemsize

    # ---- Tile sizing -------------------------------------------------------
    def_tm, def_th = _device_defaults()
    tm = int(tile_rows) if tile_rows is not None else def_tm
    th = int(hidden_tile) if hidden_tile is not None else def_th

    tm = max(8, (tm // 8) * 8)
    tm = min(tm, _round_up(rows, 8))            # don't over-allocate tiny inputs
    th = max(128, (th // 128) * 128)
    th = min(th, _round_up(hidden, 128))

    vmem_cap = int(0.85 * _vmem_capacity_bytes())   # per-TensorCore budget

    def vmem_needed(tm_, th_):
        return int(2 * tm_ * dim * x_item           # x row tile (double buffered)
                   + 2 * tm_ * dim * o_item         # out tile (double buffered)
                   + 4 * dim * th_ * w_item         # w1/w2 slabs, double buffered
                   + 2 * th_ * 4 + 6 * dim * 4      # b1 slab, b2/gamma/beta
                   + tm_ * dim * 4                  # f32 accumulator scratch
                   + 3 * tm_ * th_ * 4              # f32 hidden-slab temps
                   + (4 << 20))                     # headroom

    # Auto-shrink tiles until the estimated footprint fits the VMEM budget.
    while vmem_needed(tm, th) > vmem_cap:
        if th > 512:
            th = max(128, (th // 2 // 128) * 128)
        elif tm > 128:
            tm = max(8, (tm // 2 // 8) * 8)
        elif th > 128:
            th = max(128, (th // 2 // 128) * 128)
        elif tm > 8:
            tm = max(8, (tm // 2 // 8) * 8)
        else:
            break

    # ---- Weight padding along the hidden (reduction) axis only -------------
    # Zero-padded w1 columns / b1 entries give h=0 -> GELU(0)=0 -> contribute 0
    # through (zero-padded) w2 rows, so the math is unchanged.
    hidden_p = _round_up(hidden, th)
    if hidden_p != hidden:
        w1p = jnp.pad(w1, ((0, 0), (0, hidden_p - hidden)))
        w2p = jnp.pad(w2, ((0, hidden_p - hidden), (0, 0)))
        b1p = jnp.pad(b1.astype(jnp.float32), (0, hidden_p - hidden)).reshape(1, hidden_p)
    else:
        w1p, w2p = w1, w2
        b1p = b1.astype(jnp.float32).reshape(1, hidden_p)
    b2p = b2.astype(jnp.float32).reshape(1, dim)
    gp = gamma.astype(jnp.float32).reshape(1, dim)
    bp = beta.astype(jnp.float32).reshape(1, dim)

    x2 = x.reshape(rows, dim)                   # free reshape, no HBM round trip

    grid = (pl.cdiv(rows, tm), hidden_p // th)  # ragged last row tile is masked

    in_specs = [
        pl.BlockSpec((tm, dim), lambda i, k: (i, 0)),   # x rows (resident over k)
        pl.BlockSpec((dim, th), lambda i, k: (0, k)),   # w1 hidden slab
        pl.BlockSpec((1, th), lambda i, k: (0, k)),     # b1 hidden slab
        pl.BlockSpec((th, dim), lambda i, k: (k, 0)),   # w2 hidden slab
        pl.BlockSpec((1, dim), lambda i, k: (0, 0)),    # b2
        pl.BlockSpec((1, dim), lambda i, k: (0, 0)),    # gamma
        pl.BlockSpec((1, dim), lambda i, k: (0, 0)),    # beta
    ]
    out_specs = pl.BlockSpec((tm, dim), lambda i, k: (i, 0))

    n_row_tiles = grid[0]
    cost = pl.CostEstimate(
        flops=int(4 * rows * dim * hidden_p),           # two matmuls
        transcendentals=int(rows * hidden_p),           # GELU erf/tanh
        bytes_accessed=int(rows * dim * (x_item + o_item)
                           + n_row_tiles * (w1p.size + w2p.size) * w_item
                           + b1p.size * 4 + 3 * dim * 4),
    )

    # Generous limit (2x the estimate) but never above ~85% of per-core VMEM.
    vmem_limit = int(min(max(2 * vmem_needed(tm, th), 32 << 20), vmem_cap))

    kernel = functools.partial(_pffn_kernel, eps=float(eps),
                               exact_gelu=bool(exact_gelu))

    out2 = pl.pallas_call(
        kernel,
        out_shape=jax.ShapeDtypeStruct((rows, dim), out_dtype),
        grid_spec=pltpu.PrefetchScalarGridSpec(
            num_scalar_prefetch=0,
            grid=grid,
            in_specs=in_specs,
            out_specs=out_specs,
            scratch_shapes=[pltpu.VMEM((tm, dim), jnp.float32)],
        ),
        compiler_params=pltpu.CompilerParams(
            dimension_semantics=("parallel", "arbitrary"),
            vmem_limit_bytes=vmem_limit,
        ),
        cost_estimate=cost,
    )(x2, w1p, b1p, w2p, b2p, gp, bp)

    return out2.reshape(B, S, dim)


def pffn_reference(x, w1, b1, w2, b2, gamma, beta, eps=1e-5):
    """Pure-JAX reference matching the PyTorch module semantics."""
    h = x @ w1 + b1
    h = 0.5 * h * (1.0 + lax.erf(h / jnp.sqrt(2.0)))
    y = h @ w2 + b2
    mean = jnp.mean(y, axis=-1, keepdims=True)
    var = jnp.mean((y - mean) ** 2, axis=-1, keepdims=True)
    return (y - mean) / jnp.sqrt(var + eps) * gamma + beta


if __name__ == "__main__":
    # Small shapes consistent with the module: batch=2, seq=8, dim=32 (hidden=128).
    B, S, dim = 2, 8, 32
    hidden = 4 * dim

    key = jax.random.PRNGKey(0)
    kx, kw1, kb1, kw2, kb2 = jax.random.split(key, 5)

    x = jax.random.normal(kx, (B, S, dim), dtype=jnp.float32)

    # Deterministic synthetic parameters (Linear weights stored as (in, out)).
    bound1 = 1.0 / math.sqrt(dim)
    w1 = jax.random.uniform(kw1, (dim, hidden), minval=-bound1, maxval=bound1,
                            dtype=jnp.float32)
    b1 = jax.random.uniform(kb1, (hidden,), minval=-bound1, maxval=bound1,
                            dtype=jnp.float32)
    bound2 = 1.0 / math.sqrt(hidden)
    w2 = jax.random.uniform(kw2, (hidden, dim), minval=-bound2, maxval=bound2,
                            dtype=jnp.float32)
    b2 = jax.random.uniform(kb2, (dim,), minval=-bound2, maxval=bound2,
                            dtype=jnp.float32)
    gamma = jnp.ones((dim,), dtype=jnp.float32)   # LayerNorm weight init
    beta = jnp.zeros((dim,), dtype=jnp.float32)   # LayerNorm bias init

    ref = pffn_reference(x, w1, b1, w2, b2, gamma, beta)

    # Exact-precision path (no bf16 cast): matches the PyTorch module closely.
    out_exact = jax.block_until_ready(
        pffn_pallas(x, w1, b1, w2, b2, gamma, beta, matmul_dtype=None))
    assert out_exact.shape == (B, S, dim)
    err = float(jnp.max(jnp.abs(out_exact - ref)))
    assert err < 1e-4, f"f32 path max abs err {err}"

    # Default path (auto -> bf16 MXU operands, f32 accumulation).
    out = jax.block_until_ready(pffn_pallas(x, w1, b1, w2, b2, gamma, beta))
    assert out.shape == (B, S, dim)
    err_bf16 = float(jnp.max(jnp.abs(out - ref)))
    assert err_bf16 < 1e-1, f"bf16 path max abs err {err_bf16}"

    print("KERNEL_OK")
</pallas_src>

<mosaic_0001>
module attributes {stable_mosaic.version = 11 : i64} {
  func.func @_pffn_kernel(%arg0: i32, %arg1: i32, %arg2: memref<16x32xf32, #tpu.memory_space<vmem>>, %arg3: memref<32x128xf32, #tpu.memory_space<vmem>>, %arg4: memref<1x128xf32, #tpu.memory_space<vmem>>, %arg5: memref<128x32xf32, #tpu.memory_space<vmem>>, %arg6: memref<1x32xf32, #tpu.memory_space<vmem>>, %arg7: memref<1x32xf32, #tpu.memory_space<vmem>>, %arg8: memref<1x32xf32, #tpu.memory_space<vmem>>, %arg9: memref<16x32xf32, #tpu.memory_space<vmem>>, %arg10: memref<16x32xf32, #tpu.memory_space<vmem>>) attributes {dimension_semantics = [#tpu.dimension_semantics<parallel>, #tpu.dimension_semantics<arbitrary>], iteration_bounds = array<i64: 1, 1>, scalar_prefetch = 0 : i64, scratch_operands = 1 : i64, tpu.core_type = #tpu.core_type<tc>, window_params = [{transform_indices = @transform_0, window_bounds = array<i64: 16, 32>}, {transform_indices = @transform_1, window_bounds = array<i64: 32, 128>}, {transform_indices = @transform_2, window_bounds = array<i64: 1, 128>}, {transform_indices = @transform_3, window_bounds = array<i64: 128, 32>}, {pipeline_mode = #tpu.pipeline_mode<synchronous>, transform_indices = @transform_4, window_bounds = array<i64: 1, 32>}, {pipeline_mode = #tpu.pipeline_mode<synchronous>, transform_indices = @transform_5, window_bounds = array<i64: 1, 32>}, {pipeline_mode = #tpu.pipeline_mode<synchronous>, transform_indices = @transform_6, window_bounds = array<i64: 1, 32>}, {transform_indices = @transform_7, window_bounds = array<i64: 16, 32>}]} {
    %c0_i32 = arith.constant 0 : i32
    %0 = arith.cmpi eq, %arg1, %c0_i32 : i32
    %1 = arith.extui %0 : i1 to i32
    %c0_i32_0 = arith.constant 0 : i32
    %2 = arith.cmpi ne, %1, %c0_i32_0 : i32
    scf.if %2 {
      %cst_18 = arith.constant 0.000000e+00 : f32
      %25 = vector.broadcast %cst_18 : f32 to vector<16x32xf32>
      %c0_19 = arith.constant 0 : index
      %c0_20 = arith.constant 0 : index
      %26 = vector.load %arg10[%c0_19, %c0_20] : memref<16x32xf32, #tpu.memory_space<vmem>>, vector<16x32xf32>
      tpu.vector_store %arg10[%c0_19, %c0_20], %25 {strides = array<i32>} : memref<16x32xf32, #tpu.memory_space<vmem>>, vector<16x32xf32>,
    } else {
    }
    %c0 = arith.constant 0 : index
    %c0_1 = arith.constant 0 : index
    %3 = vector.load %arg2[%c0, %c0_1] : memref<16x32xf32, #tpu.memory_space<vmem>>, vector<16x32xf32>
    %c0_2 = arith.constant 0 : index
    %c0_3 = arith.constant 0 : index
    %4 = vector.load %arg3[%c0_2, %c0_3] : memref<32x128xf32, #tpu.memory_space<vmem>>, vector<32x128xf32>
    %cst = arith.constant dense<0.000000e+00> : vector<16x128xf32>
    %5 = tpu.matmul %3, %4, %cst {dimension_numbers = #tpu.dot_dimension_numbers<[1], [0], [0], [1], [0, 0, 1, 1], [], []>} : vector<16x32xf32>, vector<32x128xf32>, vector<16x128xf32> -> vector<16x128xf32>
    %c0_4 = arith.constant 0 : index
    %c0_5 = arith.constant 0 : index
    %6 = vector.load %arg4[%c0_4, %c0_5] : memref<1x128xf32, #tpu.memory_space<vmem>>, vector<1x128xf32>
    %7 = vector.broadcast %6 : vector<1x128xf32> to vector<16x128xf32>
    %8 = arith.addf %5, %7 : vector<16x128xf32>
    %cst_6 = arith.constant 5.000000e-01 : f32
    %9 = vector.broadcast %cst_6 : f32 to vector<16x128xf32>
    %10 = arith.mulf %9, %8 : vector<16x128xf32>
    %cst_7 = arith.constant 0.707106769 : f32
    %11 = vector.broadcast %cst_7 : f32 to vector<16x128xf32>
    %12 = arith.mulf %8, %11 : vector<16x128xf32>
    %13 = math.erf %12 : vector<16x128xf32>
    %cst_8 = arith.constant 1.000000e+00 : f32
    %14 = vector.broadcast %cst_8 : f32 to vector<16x128xf32>
    %15 = arith.addf %14, %13 : vector<16x128xf32>
    %16 = arith.mulf %10, %15 : vector<16x128xf32>
    %c0_9 = arith.constant 0 : index
    %c0_10 = arith.constant 0 : index
    %17 = vector.load %arg10[%c0_9, %c0_10] : memref<16x32xf32, #tpu.memory_space<vmem>>, vector<16x32xf32>
    %c0_11 = arith.constant 0 : index
    %c0_12 = arith.constant 0 : index
    %18 = vector.load %arg5[%c0_11, %c0_12] : memref<128x32xf32, #tpu.memory_space<vmem>>, vector<128x32xf32>
    %cst_13 = arith.constant dense<0.000000e+00> : vector<16x32xf32>
    %19 = tpu.matmul %16, %18, %cst_13 {dimension_numbers = #tpu.dot_dimension_numbers<[1], [0], [0], [1], [0, 0, 1, 1], [], []>} : vector<16x128xf32>, vector<128x32xf32>, vector<16x32xf32> -> vector<16x32xf32>
    %20 = arith.addf %17, %19 : vector<16x32xf32>
    %c0_14 = arith.constant 0 : index
    %c0_15 = arith.constant 0 : index
    %21 = vector.load %arg10[%c0_14, %c0_15] : memref<16x32xf32, #tpu.memory_space<vmem>>, vector<16x32xf32>
    tpu.vector_store %arg10[%c0_14, %c0_15], %20 {strides = array<i32>} : memref<16x32xf32, #tpu.memory_space<vmem>>, vector<16x32xf32>,
    %c0_i32_16 = arith.constant 0 : i32
    %22 = arith.cmpi eq, %arg1, %c0_i32_16 : i32
    %23 = arith.extui %22 : i1 to i32
    %c0_i32_17 = arith.constant 0 : i32
    %24 = arith.cmpi ne, %23, %c0_i32_17 : i32
    scf.if %24 {
      %c0_18 = arith.constant 0 : index
      %c0_19 = arith.constant 0 : index
      %25 = vector.load %arg10[%c0_18, %c0_19] : memref<16x32xf32, #tpu.memory_space<vmem>>, vector<16x32xf32>
      %c0_20 = arith.constant 0 : index
      %c0_21 = arith.constant 0 : index
      %26 = vector.load %arg6[%c0_20, %c0_21] : memref<1x32xf32, #tpu.memory_space<vmem>>, vector<1x32xf32>
      %27 = vector.broadcast %26 : vector<1x32xf32> to vector<16x32xf32>
      %28 = arith.addf %25, %27 : vector<16x32xf32>
      %cst_22 = arith.constant dense<0.000000e+00> : vector<16xf32>
      %29 = vector.multi_reduction <add>, %28, %cst_22 [1] : vector<16x32xf32> to vector<16xf32>
      %30 = vector.shape_cast %29 : vector<16xf32> to vector<16x1xf32>
      %cst_23 = arith.constant 3.200000e+01 : f32
      %31 = vector.broadcast %cst_23 : f32 to vector<16x1xf32>
      %32 = arith.divf %30, %31 : vector<16x1xf32>
      %33 = vector.broadcast %32 : vector<16x1xf32> to vector<16x32xf32>
      %34 = arith.subf %28, %33 : vector<16x32xf32>
      %35 = arith.mulf %34, %34 : vector<16x32xf32>
      %cst_24 = arith.constant dense<0.000000e+00> : vector<16xf32>
      %36 = vector.multi_reduction <add>, %35, %cst_24 [1] : vector<16x32xf32> to vector<16xf32>
      %37 = vector.shape_cast %36 : vector<16xf32> to vector<16x1xf32>
      %cst_25 = arith.constant 3.200000e+01 : f32
      %38 = vector.broadcast %cst_25 : f32 to vector<16x1xf32>
      %39 = arith.divf %37, %38 : vector<16x1xf32>
      %cst_26 = arith.constant 9.99999974E-6 : f32
      %40 = vector.broadcast %cst_26 : f32 to vector<16x1xf32>
      %41 = arith.addf %39, %40 : vector<16x1xf32>
      %42 = math.rsqrt %41 : vector<16x1xf32>
      %43 = vector.broadcast %42 : vector<16x1xf32> to vector<16x32xf32>
      %44 = arith.mulf %34, %43 : vector<16x32xf32>
      %c0_27 = arith.constant 0 : index
      %c0_28 = arith.constant 0 : index
      %45 = vector.load %arg7[%c0_27, %c0_28] : memref<1x32xf32, #tpu.memory_space<vmem>>, vector<1x32xf32>
      %46 = vector.broadcast %45 : vector<1x32xf32> to vector<16x32xf32>
      %47 = arith.mulf %44, %46 : vector<16x32xf32>
      %c0_29 = arith.constant 0 : index
      %c0_30 = arith.constant 0 : index
      %48 = vector.load %arg8[%c0_29, %c0_30] : memref<1x32xf32, #tpu.memory_space<vmem>>, vector<1x32xf32>
      %49 = vector.broadcast %48 : vector<1x32xf32> to vector<16x32xf32>
      %50 = arith.addf %47, %49 : vector<16x32xf32>
      %c0_31 = arith.constant 0 : index
      %c0_32 = arith.constant 0 : index
      %51 = vector.load %arg9[%c0_31, %c0_32] : memref<16x32xf32, #tpu.memory_space<vmem>>, vector<16x32xf32>
      tpu.vector_store %arg9[%c0_31, %c0_32], %50 {strides = array<i32>} : memref<16x32xf32, #tpu.memory_space<vmem>>, vector<16x32xf32>,
    } else {
    }
    return
  }
  func.func @transform_0(%arg0: i32, %arg1: i32) -> (i32, i32) {
    %c0_i32 = arith.constant 0 : i32
    %c0_i32_0 = arith.constant 0 : i32
    return %arg0, %c0_i32 : i32, i32
  }
  func.func @transform_1(%arg0: i32, %arg1: i32) -> (i32, i32) {
    %c0_i32 = arith.constant 0 : i32
    %c0_i32_0 = arith.constant 0 : i32
    return %c0_i32, %arg1 : i32, i32
  }
  func.func @transform_2(%arg0: i32, %arg1: i32) -> (i32, i32) {
    %c0_i32 = arith.constant 0 : i32
    %c0_i32_0 = arith.constant 0 : i32
    return %c0_i32, %arg1 : i32, i32
  }
  func.func @transform_3(%arg0: i32, %arg1: i32) -> (i32, i32) {
    %c0_i32 = arith.constant 0 : i32
    %c0_i32_0 = arith.constant 0 : i32
    return %arg1, %c0_i32 : i32, i32
  }
  func.func @transform_4(%arg0: i32, %arg1: i32) -> (i32, i32) {
    %c0_i32 = arith.constant 0 : i32
    %c0_i32_0 = arith.constant 0 : i32
    %c0_i32_1 = arith.constant 0 : i32
    return %c0_i32, %c0_i32_0 : i32, i32
  }
  func.func @transform_5(%arg0: i32, %arg1: i32) -> (i32, i32) {
    %c0_i32 = arith.constant 0 : i32
    %c0_i32_0 = arith.constant 0 : i32
    %c0_i32_1 = arith.constant 0 : i32
    return %c0_i32, %c0_i32_0 : i32, i32
  }
  func.func @transform_6(%arg0: i32, %arg1: i32) -> (i32, i32) {
    %c0_i32 = arith.constant 0 : i32
    %c0_i32_0 = arith.constant 0 : i32
    %c0_i32_1 = arith.constant 0 : i32
    return %c0_i32, %c0_i32_0 : i32, i32
  }
  func.func @transform_7(%arg0: i32, %arg1: i32) -> (i32, i32) {
    %c0_i32 = arith.constant 0 : i32
    %c0_i32_0 = arith.constant 0 : i32
    return %arg0, %c0_i32 : i32, i32
  }
}

</mosaic_0001>

<bundles_post_ra>
// kernel: tpu_custom_call.1
= control target key start
LH: loop header
LB: loop body
LE: loop exit
PB: predicated region body
PF: predicated region fallthrough
CT: control target
= control target key end

     0   :  { %vm31_vm0 = vcmask 261120   ;;  %s611_s0 = inlined_call_operand.vmem [shape: f32[16,32], index: 0, kind: input, shape index: {}]   ;;  %s612_s1 = inlined_call_operand.vmem [shape: f32[32,128], index: 1, kind: input, shape index: {}]   ;;  %s613_s2 = inlined_call_operand.vmem [shape: f32[1,128], index: 2, kind: input, shape index: {}]   ;;  %s614_s3 = inlined_call_operand.vmem [shape: f32[128,32], index: 3, kind: input, shape index: {}]   ;;  %s615_s4 = inlined_call_operand.vmem [shape: f32[1,32], index: 4, kind: input, shape index: {}]   ;;  %s616_s5 = inlined_call_operand.vmem [shape: f32[1,32], index: 5, kind: input, shape index: {}]   ;;  %s617_s6 = inlined_call_operand.vmem [shape: f32[1,32], index: 6, kind: input, shape index: {}]   ;;  %s618_s7 = inlined_call_operand.hbm [shape: f32[16,32], index: 7, kind: output, shape index: {}]  }
   0x1   :  { %v36_v0 = vld [vmem:[%s612_s1] sm:$0xff]  ;;  %v37_v1 = vld [vmem:[%s612_s1 + $0x8] sm:$0xff]  ;;  %v38_v2 = vld [vmem:[%s612_s1 + $0x10] sm:$0xff] }
   0x2   :  { %v389_v3 = vpack.c.bf16 %v37_v1, %v36_v0  ;;  %v39_v4 = vld [vmem:[%s612_s1 + $0x18] sm:$0xff]  ;;  %v34_v5 = vld [vmem:[%s611_s0] sm:$0xff]  ;;  %v142_v8 = vld [vmem:[%s614_s3 + $0x8] sm:$0xff] }
   0x3   :  { %v393_v6 = vpack.c.bf16 %v39_v4, %v38_v2  ;;  %351 = vmatprep.mubr.msk.f32.mxu0 %vm31_vm0, %v34_v5  ;;  %v141_v7 = vld [vmem:[%s614_s3] sm:$0xff]  ;;  %v143_v9 = vld [vmem:[%s614_s3 + $0x10] sm:$0xff]  ;;  %v144_v11 = vld [vmem:[%s614_s3 + $0x18] sm:$0xff] }
   0x4   :  { %390 = vmatprep.subr.bf16.mxu0 %v389_v3  ;;  %v397_v10 = vpack.c.bf16 %v142_v8, %v141_v7  ;;  %v401_v12 = vpack.c.bf16 %v144_v11, %v143_v9  ;;  %v145_v13 = vld [vmem:[%s614_s3 + $0x20] sm:$0xff]  ;;  %v146_v14 = vld [vmem:[%s614_s3 + $0x28] sm:$0xff] }
   0x5   :  { %392 = vmatpush3.bf16.msra.mxu0 %v389_v3 }
   0x6   :  { %12 = vsyncpa [#allocation4], 0  ;;  %394 = vmatprep.subr.bf16.mxu0 %v393_v6  ;;  %398 = vmatprep.subr.bf16.mxu1 %v397_v10  ;;  %v405_v15 = vpack.c.bf16 %v146_v14, %v145_v13  ;;  %v35_v16 = vld [vmem:[%s611_s0 + $0x8] sm:$0xff]  ;;  %v147_v17 = vld [vmem:[%s614_s3 + $0x30] sm:$0xff]  ;;  %v465_v32 = vmov 0.0   ;;  %s466_s24 = smov [#allocation3]  }
   0x7   :  { %400 = vmatpush3.bf16.msra.mxu1 %v397_v10  ;;  %v148_v18 = vld [vmem:[%s614_s3 + $0x38] sm:$0xff]  ;;  %v149_v20 = vld [vmem:[%s614_s3 + $0x40] sm:$0xff]  ;;  %v150_v21 = vld [vmem:[%s614_s3 + $0x48] sm:$0xff]  ;;  %33 = vst.msk [vmem:[#allocation2 + $0x8] sm:$0xff] %vm31_vm0, %v465_v32  ;;  %s302_s25 = sshll.u32 %s466_s24, 4  ;;  %s303_s25 = int_to_ptr.vmem [resolvable:$true] %s302_s25 }
   0x8   :  { %402 = vmatprep.subr.bf16.mxu1 %v401_v12  ;;  %v409_v19 = vpack.c.bf16 %v148_v18, %v147_v17  ;;  %v413_v22 = vpack.c.bf16 %v150_v21, %v149_v20  ;;  %v151_v23 = vld [vmem:[%s614_s3 + $0x50] sm:$0xff]  ;;  %v152_v24 = vld [vmem:[%s614_s3 + $0x58] sm:$0xff]  ;;  %v153_v26 = vld [vmem:[%s614_s3 + $0x60] sm:$0xff]  ;;  %32 = vst.msk [vmem:[#allocation2] sm:$0xff] %vm31_vm0, %v465_v32  ;;  %s441_s26 = scalar_lea.vmem %s303_s25, 256  ;;  %p446_p1 = scmp.lt.s32.totalorder %s303_s25, %s303_s25 }
   0x9   :  { %396 = vmatpush3.bf16.msra.mxu0 %v393_v6  ;;  %v417_v25 = vpack.c.bf16 %v152_v24, %v151_v23  ;;  %v154_v27 = vld [vmem:[%s614_s3 + $0x68] sm:$0xff]  ;;  %v155_v29 = vld [vmem:[%s614_s3 + $0x70] sm:$0xff]  ;;  %v156_v30 = vld [vmem:[%s614_s3 + $0x78] sm:$0xff]  ;;  %p442_p0 = scmp.ne.s32.totalorder %s303_s25, %s441_s26  ;;  %p447_p2 = scmp.lt.s32.totalorder %s441_s26, %s441_s26 }
   0xa   :  { %v421_v28 = vpack.c.bf16 %v154_v27, %v153_v26  ;;  %v425_v31 = vpack.c.bf16 %v156_v30, %v155_v29  ;;  %v313_v33 = vld [vmem:[%s613_s2] ss:$0 sm:$0xff] }
   0xb   :  { %404 = vmatpush3.bf16.msra.mxu1 %v401_v12  ;;  %v316_v54 = vld [vmem:[%s615_s4] ss:$0 sm:$0xff]  ;;  %p448_p3 = por %p447_p2, %p446_p1 }
   0xc   :  { %352 = vmatmul.mubr.msk.f32.vlgmr.msra.gmra.mrb[0].mxu0 %vm31_vm0, %v35_v16  ;;  %406 = vmatprep.subr.bf16.mxu1 %v405_v15  ;;  %v317_v14 = vld [vmem:[%s616_s5] ss:$0 sm:$0xff] }
   0xd   :  { %v318_v16 = vld [vmem:[%s617_s6] ss:$0 sm:$0xff]  ;;  %p449_p4 = pnand %p448_p3, %p442_p0 }
   0xe   :  { %v140_v48 = vld [vmem:[#allocation2 + $0x8] sm:$0xff] }
   0xf   :  { %408 = vmatpush3.bf16.msra.mxu1 %v405_v15  ;;  %v139_v49 = vld [vmem:[#allocation2] sm:$0xff] }
  0x10   :  { %410 = vmatprep.subr.bf16.mxu1 %v409_v19 }
  0x13   :  { %412 = vmatpush3.bf16.msra.mxu1 %v409_v19 }
  0x14   :  { %414 = vmatprep.subr.bf16.mxu1 %v413_v22 }
  0x17   :  { %416 = vmatpush3.bf16.msra.mxu1 %v413_v22 }
  0x18   :  { %418 = vmatprep.subr.bf16.mxu1 %v417_v25 }
  0x1b   :  { %420 = vmatpush3.bf16.msra.mxu1 %v417_v25 }
  0x1c   :  { %422 = vmatprep.subr.bf16.mxu1 %v421_v28 }
  0x1f   :  { %424 = vmatpush3.bf16.msra.mxu1 %v421_v28 }
  0x20   :  { %426 = vmatprep.subr.bf16.mxu1 %v425_v31 }
  0x23   :  { %428 = vmatpush3.bf16.msra.mxu1 %v425_v31 }
  0xdf   :  { %v353_v34 = vpop.f32.mrb[0].mxu0 }
  0xe0   :  { %v126_v35 = vadd.f32 %v353_v34, %v313_v33  ;;  %v120_v36 = vpop.f32.mrb[1].mxu0 }
  0xe1   :  { %v121_v37 = vadd.f32 %v313_v33, %v120_v36 }
  0xe2   :  { %v132_v38 = vmul.f32 0.70710677, %v126_v35  ;;  %v130_v45 = vmul.f32 0.5, %v126_v35 }
  0xe3   :  { %v131_v39 = vmul.f32 0.70710677, %v121_v37  ;;  %v129_v43 = vmul.f32 0.5, %v121_v37 }
  0xe4   :  { %433 = verf.f32 %v132_v38 }
  0xe5   :  { %435 = verf.f32 %v131_v39 }
  0xee   :  { %v434_v40 = vpop.eup %433 }
  0xef   :  { %v436_v41 = vpop.eup %435  ;;  %v136_v42 = vadd.f32 1.0, %v434_v40 }
  0xf0   :  { %v135_v44 = vadd.f32 1.0, %v436_v41 }
  0xf1   :  { %v138_v47 = vmul.f32 %v136_v42, %v130_v45 }
  0xf2   :  { %v137_v46 = vmul.f32 %v135_v44, %v129_v43 }
  0xf4   :  { %386 = vmatprep.mubr.f32.mxu1 %v137_v46 }
  0xf5   :  { %387 = vmatmul.mubr.f32.vlgmr.msra.gmra.mrb[0].mxu1 %v138_v47 }
 0x1c8   :  { %v388_v50 = vpop.f32.mrb[0].mxu1 }
 0x1c9   :  { %v233_v51 = vadd.f32 %v388_v50, %v140_v48  ;;  %v223_v52 = vpop.f32.mrb[1].mxu1 }
 0x1ca   :  { %v232_v53 = vadd.f32 %v223_v52, %v139_v49 }
 0x1cb   :  { %235 = vst.msk [vmem:[#allocation2 + $0x8] sm:$0xff] %vm31_vm0, %v233_v51 }
 0x1cc   :  { %234 = vst.msk [vmem:[#allocation2] sm:$0xff] %vm31_vm0, %v232_v53 }
 0x1d2   :  { %v240_v56 = vld [vmem:[#allocation2 + $0x8] sm:$0xff] }
 0x1d3   :  { %v239_v55 = vld [vmem:[#allocation2] sm:$0xff]  ;;  %v249_v59 = vadd.f32 %v316_v54, %v240_v56 }
 0x1d4   :  { %v248_v57 = vadd.f32 %v316_v54, %v239_v55 }
 0x1d5   :  { %v253_v60 = vsel %vm31_vm0, %v249_v59, 0.0 }
 0x1d6   :  { %v250_v58 = vsel %vm31_vm0, %v248_v57, 0.0 }
 0x1d7   :  { %251 = vadd.xlane.f32.xlu0 %v250_v58 }
 0x1db   :  { %254 = vadd.xlane.f32.xlu0 %v253_v60 }
 0x264   :  { %v252_v61 = vpop.xlane.xlu0 %251 }
 0x265   :  { %v257_v62 = vmul.f32 0.03125, %v252_v61 }
 0x267   :  { %v259_v63 = vsub.f32 %v248_v57, %v257_v62 }
 0x268   :  { %v255_v0 = vpop.xlane.xlu0 %254 }
 0x269   :  { %v258_v1 = vmul.f32 0.03125, %v255_v0  ;;  %v261_v2 = vmul.f32 %v259_v63, %v259_v63 }
 0x26b   :  { %v260_v3 = vsub.f32 %v249_v59, %v258_v1  ;;  %v263_v4 = vsel %vm31_vm0, %v261_v2, 0.0 }
 0x26c   :  { %264 = vadd.xlane.f32.xlu1 %v263_v4 }
 0x26d   :  { %v262_v5 = vmul.f32 %v260_v3, %v260_v3 }
 0x26f   :  { %v266_v6 = vsel %vm31_vm0, %v262_v5, 0.0 }
 0x270   :  { %267 = vadd.xlane.f32.xlu1 %v266_v6 }
 0x2f9   :  { %v265_v7 = vpop.xlane.xlu1 %264 }
 0x2fa   :  { %v269_v8 = vmul.f32 0.03125, %v265_v7 }
 0x2fc   :  { %v271_v9 = vadd.f32 1e-05, %v269_v8 }
 0x2fd   :  { %v268_v10 = vpop.xlane.xlu1 %267 }
 0x2fe   :  { %437 = vrsqrt.f32 %v271_v9  ;;  %v270_v11 = vmul.f32 0.03125, %v268_v10 }
 0x300   :  { %v272_v12 = vadd.f32 1e-05, %v270_v11 }
 0x302   :  { %439 = vrsqrt.f32 %v272_v12 }
 0x308   :  { %v438_v13 = vpop.eup %437 }
 0x309   :  { %v275_v15 = vmul.f32 %v438_v13, %v259_v63 }
 0x30b   :  { %v284_v17 = vmul.f32 %v317_v14, %v275_v15 }
 0x30c   :  { %v440_v18 = vpop.eup %439 }
 0x30d   :  { %v276_v19 = vmul.f32 %v440_v18, %v260_v3  ;;  %v293_v20 = vadd.f32 %v318_v16, %v284_v17 }
 0x30f   :  { %v285_v21 = vmul.f32 %v317_v14, %v276_v19  ;;  %295 = vst.msk [vmem:[#allocation3] sm:$0xff] %vm31_vm0, %v293_v20 }
 0x311   :  { %v294_v22 = vadd.f32 %v318_v16, %v285_v21 }
 0x313   :  { %296 = vst.msk [vmem:[#allocation3 + $0x8] sm:$0xff] %vm31_vm0, %v294_v22 }
 0x314   :  { %452 = shalt.err (!%p449_p4)
}
 0x315   :  { %s453_s27 = scalar_lea.hbm %s618_s7, 256 }
 0x316   :  { %p454_p5 = scmp.ne.s32.totalorder %s618_s7, %s453_s27  ;;  %p457_p6 = scmp.lt.u32.totalorder %s453_s27, %s618_s7 }
 0x318   :  { %p459_p7 = pnand %p457_p6, %p454_p5 }
 0x31a   :  { %462 = shalt.err (!%p459_p7)
}
 0x31b   :  { %s467_s8 = smov 128   ;;  %s468_s9 = smov 8  }
 0x31c   :  { %308 = dma.vmem_to_hbm [thread:$0]  %s303_s25, 256, %s618_s7, [#allocation4], %s467_s8, %s467_s8, %s468_s9  }
 0x31d   :  { %463 = dma.done.wait [#allocation4], 256  }
 0x31e   :  { %464 = vsyncadd [#allocation4], 4294967040 }
 0x31f   :  { %312 = vsyncpa [#allocation4], 1 }

</bundles_post_ra>
